<compile_context>
chip_gen: v7x
topology: tpu7x:2x2x1
jax: 0.10.0
libtpu: 0.0.40
codegen_flags: <defaults>
</compile_context>

<pallas_src>
import functools
import math

import jax
import jax.numpy as jnp
from jax import lax
from jax.experimental import pallas as pl
from jax.experimental.pallas import tpu as pltpu


TILE = 128       # dst-row tile (MXU M dim; sublane-legal for f32/bf16/int8)
SRC_TILE = 128   # src-row tile (lane-dense mask / logits N dim)


def _pad_to(n, m):
    return ((n + m - 1) // m) * m


def _block_diag_heads(m):
    """(H, d_k, d_k) -> block-diagonal (H*d_k, H*d_k)."""
    n_heads, d_k, _ = m.shape
    eye = jnp.eye(n_heads, dtype=m.dtype)
    return jnp.einsum("hij,hg->higj", m, eye).reshape(n_heads * d_k, n_heads * d_k)


# ---------------------------------------------------------------------------
# Stage 1: fused K|Q|V projection, batched over node types.
# ---------------------------------------------------------------------------
def hgt_proj_kernel(h_ref, w_ref, b_ref, o_ref):
    y = jnp.dot(h_ref[...], w_ref[...],
                preferred_element_type=jnp.float32) + b_ref[...]
    o_ref[...] = y.astype(jnp.bfloat16)


def run_proj(h_all, w_all, b_all):
    n_types, n_rows, in_dim = h_all.shape
    out3 = w_all.shape[-1]
    return pl.pallas_call(
        hgt_proj_kernel,
        out_shape=jax.ShapeDtypeStruct((n_types, n_rows, out3), jnp.bfloat16),
        grid_spec=pltpu.PrefetchScalarGridSpec(
            num_scalar_prefetch=0,
            grid=(n_types, n_rows // TILE),
            in_specs=[
                pl.BlockSpec((None, TILE, in_dim), lambda t, i: (t, i, 0)),
                pl.BlockSpec((None, in_dim, out3), lambda t, i: (t, 0, 0)),
                pl.BlockSpec((None, 1, out3), lambda t, i: (t, 0, 0)),
            ],
            out_specs=pl.BlockSpec((None, TILE, out3), lambda t, i: (t, i, 0))),
        compiler_params=pltpu.CompilerParams(
            dimension_semantics=("parallel", "parallel")),
    )(h_all, w_all, b_all)


# ---------------------------------------------------------------------------
# Stage 2: fused per-destination-type relation reduction with online softmax.
# ---------------------------------------------------------------------------
def hgt_dst_kernel(sid_ref, q_ref, hd_ref, k_ref, v_ref, attq_ref, msg_ref,
                   mask_ref, aw_ref, ab_ref, alpha_ref, out_ref,
                   qr_scr, m_scr, l_scr, sacc_scr,
                   *, n_heads, d_k, inv_nrel):
    """grid = (dst_tiles, n_relations, src_tiles).

    q_ref    : (TILE, out_dim)        bf16  dst queries
    hd_ref   : (TILE, in_dim)         f32   dst features (skip branch)
    k_ref    : (SRC_TILE, out_dim)    bf16  src keys, gathered by src-type id
    v_ref    : (SRC_TILE, out_dim)    bf16  src values, gathered by src-type id
    attq_ref : (out_dim, out_dim)     bf16  block-diag att_h^T * pri_h/sqrt(dk)
    msg_ref  : (out_dim, out_dim)     bf16  block-diag msg_h
    mask_ref : (TILE, SRC_TILE)       int8  adjacency tile
    out_ref  : (TILE, out_dim)        f32   resident across (r, s) => accumulator
    """
    del sid_ref  # consumed by the K/V index_maps (scalar-prefetch gather)
    r = pl.program_id(1)
    s = pl.program_id(2)
    n_rel = pl.num_programs(1)
    n_src_tiles = pl.num_programs(2)

    @pl.when(jnp.logical_and(r == 0, s == 0))
    def _init_out():
        out_ref[...] = jnp.zeros_like(out_ref)

    @pl.when(s == 0)
    def _init_rel():
        # relation_att folded into the (small) dst query instead of the src keys
        qr = jnp.dot(q_ref[...], attq_ref[...], preferred_element_type=jnp.float32)
        qr_scr[...] = qr.astype(jnp.bfloat16)
        m_scr[...] = jnp.full_like(m_scr, -1e30)
        l_scr[...] = jnp.zeros_like(l_scr)
        sacc_scr[...] = jnp.zeros_like(sacc_scr)

    qr = qr_scr[...]
    k = k_ref[...]
    v = v_ref[...]
    mask = mask_ref[...].astype(jnp.float32)              # (TILE, SRC_TILE)
    neg_bias = jnp.where(mask > 0, 0.0, -1e30)

    # Head-stacked 2-D logits slab (H*TILE, SRC_TILE): per-head dot contracting
    # the LAST dims of both operands (no in-kernel transpose).
    blocks = []
    for hh in range(n_heads):
        c = slice(hh * d_k, (hh + 1) * d_k)
        lh = lax.dot_general(qr[:, c], k[:, c],
                             dimension_numbers=(((1,), (1,)), ((), ())),
                             preferred_element_type=jnp.float32)
        blocks.append(lh + neg_bias)
    logits = jnp.concatenate(blocks, axis=0)
    mask_h = jnp.concatenate([mask] * n_heads, axis=0)

    # Online (flash-style) softmax update across source tiles.
    m_prev = m_scr[...]
    m_new = jnp.maximum(m_prev, jnp.max(logits, axis=-1, keepdims=True))
    corr = jnp.exp(m_prev - m_new)                        # (H*TILE, 1)
    p = jnp.exp(logits - m_new) * mask_h
    l_scr[...] = corr * l_scr[...] + jnp.sum(p, axis=-1, keepdims=True)
    m_scr[...] = m_new

    p_bf = p.astype(jnp.bfloat16)
    sacc = sacc_scr[...]
    parts = []
    for hh in range(n_heads):
        c = slice(hh * d_k, (hh + 1) * d_k)
        rws = slice(hh * TILE, (hh + 1) * TILE)
        parts.append(corr[rws] * sacc[:, c] +
                     jnp.dot(p_bf[rws], v[:, c], preferred_element_type=jnp.float32))
    sacc_scr[...] = jnp.concatenate(parts, axis=-1)

    # End of this relation: normalize, apply relation_msg, add (mean over rels).
    @pl.when(s == n_src_tiles - 1)
    def _rel_done():
        l = l_scr[...]
        inv_l = jnp.where(l > 0.0,
                          pl.reciprocal(jnp.maximum(l, 1e-30), approx=True), 0.0)
        sa = sacc_scr[...]
        normed = jnp.concatenate(
            [sa[:, hh * d_k:(hh + 1) * d_k] * inv_l[hh * TILE:(hh + 1) * TILE]
             for hh in range(n_heads)], axis=-1)          # (TILE, out_dim)
        msg_out = jnp.dot(normed.astype(jnp.bfloat16), msg_ref[...],
                          preferred_element_type=jnp.float32)
        out_ref[...] += msg_out * inv_nrel

    # End of all relations: a_linear + skip combine in place.
    @pl.when(jnp.logical_and(r == n_rel - 1, s == n_src_tiles - 1))
    def _final():
        t = out_ref[...]
        trans = jnp.dot(t.astype(jnp.bfloat16), aw_ref[...],
                        preferred_element_type=jnp.float32) + ab_ref[...]
        a = alpha_ref[...]
        # TODO(synk): nn.Dropout is inference identity; use_norm=False path only.
        out_ref[...] = trans * a + hd_ref[...] * (1.0 - a)


def run_dst_group(src_ids, q_d, h_d, k_types, v_types, attq_bd, msg_bd,
                  mask_all, a_w, a_b, alpha_vec, *, n_heads, d_k):
    nd_pad, out_dim = q_d.shape
    in_dim = h_d.shape[1]
    n_rel = attq_bd.shape[0]
    ns_pad = k_types.shape[1]
    kernel = functools.partial(hgt_dst_kernel, n_heads=n_heads, d_k=d_k,
                               inv_nrel=1.0 / n_rel)
    return pl.pallas_call(
        kernel,
        out_shape=jax.ShapeDtypeStruct((nd_pad, out_dim), jnp.float32),
        grid_spec=pltpu.PrefetchScalarGridSpec(
            num_scalar_prefetch=1,                       # src-type id per relation
            grid=(nd_pad // TILE, n_rel, ns_pad // SRC_TILE),
            in_specs=[
                pl.BlockSpec((TILE, out_dim), lambda i, r, s, sid: (i, 0)),      # q
                pl.BlockSpec((TILE, in_dim), lambda i, r, s, sid: (i, 0)),       # h_dst
                pl.BlockSpec((None, SRC_TILE, out_dim),
                             lambda i, r, s, sid: (sid[r], s, 0)),               # K by type
                pl.BlockSpec((None, SRC_TILE, out_dim),
                             lambda i, r, s, sid: (sid[r], s, 0)),               # V by type
                pl.BlockSpec((None, out_dim, out_dim),
                             lambda i, r, s, sid: (r, 0, 0)),                    # att^T bd
                pl.BlockSpec((None, out_dim, out_dim),
                             lambda i, r, s, sid: (r, 0, 0)),                    # msg bd
                pl.BlockSpec((None, TILE, SRC_TILE),
                             lambda i, r, s, sid: (r, i, s)),                    # mask
                pl.BlockSpec((out_dim, out_dim), lambda i, r, s, sid: (0, 0)),   # a_w
                pl.BlockSpec((1, out_dim), lambda i, r, s, sid: (0, 0)),         # a_b
                pl.BlockSpec((1, out_dim), lambda i, r, s, sid: (0, 0)),         # alpha
            ],
            out_specs=pl.BlockSpec((TILE, out_dim), lambda i, r, s, sid: (i, 0)),
            scratch_shapes=[
                pltpu.VMEM((TILE, out_dim), jnp.bfloat16),      # relation-transformed Q
                pltpu.VMEM((n_heads * TILE, 1), jnp.float32),   # running max
                pltpu.VMEM((n_heads * TILE, 1), jnp.float32),   # running sum
                pltpu.VMEM((TILE, out_dim), jnp.float32),       # per-relation acc
            ]),
        compiler_params=pltpu.CompilerParams(
            dimension_semantics=("parallel", "arbitrary", "arbitrary")),
    )(src_ids, q_d, h_d, k_types, v_types, attq_bd, msg_bd, mask_all,
      a_w, a_b, alpha_vec)


# ---------------------------------------------------------------------------
# JAX glue
# ---------------------------------------------------------------------------
def hgt_forward(params, graph, h, *, n_heads, d_k, out_dim):
    node_dict = graph["node_dict"]
    edge_dict = graph["edge_dict"]
    canonical = graph["canonical"]
    masks = graph["masks"]
    sqrt_dk = math.sqrt(d_k)

    types = sorted(node_dict, key=node_dict.get)
    n_nodes = {nt: h[nt].shape[0] for nt in types}
    n_rows_pad = _pad_to(max(n_nodes.values()), TILE)     # common (lane-friendly) pad

    # ---- Stage 1: one batched call, fused [K|Q|V] projection per node type.
    h_all = jnp.stack([
        jnp.pad(h[nt], ((0, n_rows_pad - n_nodes[nt]), (0, 0))) for nt in types
    ]).astype(jnp.bfloat16)
    w_all = jnp.stack([
        jnp.concatenate([params["k_w_t"][node_dict[nt]],
                         params["q_w_t"][node_dict[nt]],
                         params["v_w_t"][node_dict[nt]]], axis=1)
        for nt in types]).astype(jnp.bfloat16)
    b_all = jnp.stack([
        jnp.concatenate([params["k_b"][node_dict[nt]],
                         params["q_b"][node_dict[nt]],
                         params["v_b"][node_dict[nt]]], axis=1)
        for nt in types]).astype(jnp.float32)
    kqv = run_proj(h_all, w_all, b_all)                   # (T, n_rows_pad, 3*out_dim)
    k_types = kqv[:, :, :out_dim]
    q_types = kqv[:, :, out_dim:2 * out_dim]
    v_types = kqv[:, :, 2 * out_dim:]

    # ---- Stage 2: one fused call per destination type.
    new_h = {}
    for dt in types:
        did = node_dict[dt]
        rels = [(st, et) for (st, et, d2) in canonical if d2 == dt]
        assert rels, f"node type {dt} has no incoming relations"
        nd_pad = _pad_to(n_nodes[dt], TILE)

        src_ids = jnp.array([node_dict[st] for st, _ in rels], jnp.int32)
        attq_list, msg_list, mask_list = [], [], []
        for st, et in rels:
            eid = edge_dict[et]
            scale = (params["rel_pri"][eid] / sqrt_dk)[:, None, None]
            att_t = jnp.swapaxes(params["rel_att"][eid], -1, -2) * scale
            attq_list.append(_block_diag_heads(att_t))
            msg_list.append(_block_diag_heads(params["rel_msg"][eid]))
            m = masks[et]
            mask_list.append(jnp.pad(
                m, ((0, nd_pad - m.shape[0]), (0, n_rows_pad - m.shape[1]))))
        attq_bd = jnp.stack(attq_list).astype(jnp.bfloat16)
        msg_bd = jnp.stack(msg_list).astype(jnp.bfloat16)
        mask_all = jnp.stack(mask_list).astype(jnp.int8)   # 1 byte/edge-slot

        q_d = q_types[did, :nd_pad]
        h_d = jnp.pad(h[dt], ((0, nd_pad - n_nodes[dt]), (0, 0))).astype(jnp.float32)
        alpha_vec = jnp.broadcast_to(
            jax.nn.sigmoid(params["skip"][did]).astype(jnp.float32), (1, out_dim))
        out = run_dst_group(src_ids, q_d, h_d, k_types, v_types, attq_bd,
                            msg_bd, mask_all,
                            params["a_w_t"][did].astype(jnp.bfloat16),
                            params["a_b"][did].astype(jnp.float32), alpha_vec,
                            n_heads=n_heads, d_k=d_k)
        new_h[dt] = out[:n_nodes[dt]]
    return new_h


# ---------------------------------------------------------------------------
# Pure-JAX fp32 reference (mirrors the PyTorch forward) for verification
# ---------------------------------------------------------------------------
def hgt_reference(params, graph, h, *, n_heads, d_k, out_dim):
    node_dict = graph["node_dict"]
    edge_dict = graph["edge_dict"]
    canonical = graph["canonical"]
    masks = graph["masks"]
    sqrt_dk = math.sqrt(d_k)

    msgs = {nt: [] for nt in node_dict}
    for (st, et, dt) in canonical:
        sid, did, eid = node_dict[st], node_dict[dt], edge_dict[et]
        k = (h[st] @ params["k_w_t"][sid] + params["k_b"][sid]).reshape(-1, n_heads, d_k)
        v = (h[st] @ params["v_w_t"][sid] + params["v_b"][sid]).reshape(-1, n_heads, d_k)
        q = (h[dt] @ params["q_w_t"][did] + params["q_b"][did]).reshape(-1, n_heads, d_k)
        k = jnp.einsum("bij,ijk->bik", k, params["rel_att"][eid])
        v = jnp.einsum("bij,ijk->bik", v, params["rel_msg"][eid])
        logits = jnp.einsum("dhc,shc->dsh", q, k) * params["rel_pri"][eid] / sqrt_dk
        mask = masks[et][:, :, None]
        masked = jnp.where(mask > 0, logits, -1e30)
        m = jnp.max(masked, axis=1, keepdims=True)
        e = jnp.exp(masked - m) * mask
        s = jnp.sum(e, axis=1, keepdims=True)
        attn = jnp.where(s > 0, e / jnp.maximum(s, 1e-30), 0.0)
        agg = jnp.einsum("dsh,shc->dhc", attn, v).reshape(-1, out_dim)
        msgs[dt].append(agg)

    out = {}
    for nt, nid in node_dict.items():
        t = jnp.mean(jnp.stack(msgs[nt], axis=0), axis=0)
        alpha = jax.nn.sigmoid(params["skip"][nid])
        trans = t @ params["a_w_t"][nid] + params["a_b"][nid]
        out[nt] = trans * alpha + h[nt] * (1.0 - alpha)
    return out


# ---------------------------------------------------------------------------
# Main
# ---------------------------------------------------------------------------
if __name__ == "__main__":
    key = jax.random.PRNGKey(0)

    in_dim = 32
    out_dim = 32
    n_heads = 4
    d_k = out_dim // n_heads

    node_dict = {"author": 0, "paper": 1}
    edge_dict = {"cites": 0, "writes": 1, "written_by": 2}
    canonical = [("author", "cites", "author"),
                 ("author", "writes", "paper"),
                 ("paper", "written_by", "author")]
    num_types = len(node_dict)
    num_relations = len(edge_dict)
    n_nodes = {"author": 12, "paper": 8}   # non-multiple of TILE exercises padding

    # ---------------- deterministic parameter init ----------------
    def linear_init(k, fan_in, shape_w, shape_b):
        kw, kb = jax.random.split(k)
        bound = 1.0 / math.sqrt(fan_in)
        w = jax.random.uniform(kw, shape_w, jnp.float32, -bound, bound)
        b = jax.random.uniform(kb, shape_b, jnp.float32, -bound, bound)
        return w, b

    params = {"k_w_t": [], "k_b": [], "q_w_t": [], "q_b": [],
              "v_w_t": [], "v_b": [], "a_w_t": [], "a_b": []}
    for t in range(num_types):
        for name, fan in (("k", in_dim), ("q", in_dim), ("v", in_dim), ("a", out_dim)):
            key, sub = jax.random.split(key)
            w, b = linear_init(sub, fan, (out_dim, fan), (out_dim,))
            params[name + "_w_t"].append(w.T)               # (fan, out_dim)
            params[name + "_b"].append(b.reshape(1, out_dim))

    # xavier_uniform for relation_att / relation_msg
    xav = math.sqrt(6.0 / (n_heads * d_k * d_k + num_relations * d_k * d_k))
    key, k1, k2 = jax.random.split(key, 3)
    params["rel_att"] = jax.random.uniform(
        k1, (num_relations, n_heads, d_k, d_k), jnp.float32, -xav, xav)
    params["rel_msg"] = jax.random.uniform(
        k2, (num_relations, n_heads, d_k, d_k), jnp.float32, -xav, xav)
    params["rel_pri"] = jnp.ones((num_relations, n_heads), jnp.float32)
    params["skip"] = jnp.ones((num_types,), jnp.float32)

    # ---------------- deterministic graph + features ----------------
    masks = {}
    for (st, et, dt) in canonical:
        key, sub = jax.random.split(key)
        masks[et] = jax.random.bernoulli(
            sub, 0.4, (n_nodes[dt], n_nodes[st])).astype(jnp.float32)
    graph = {"node_dict": node_dict, "edge_dict": edge_dict,
             "canonical": canonical, "masks": masks}

    h = {}
    for nt in node_dict:
        key, sub = jax.random.split(key)
        h[nt] = jax.random.normal(sub, (n_nodes[nt], in_dim), jnp.float32)

    # ---------------- run Pallas kernels ----------------
    new_h = hgt_forward(params, graph, h,
                        n_heads=n_heads, d_k=d_k, out_dim=out_dim)
    new_h = {k_: jax.block_until_ready(v_) for k_, v_ in new_h.items()}

    # ---------------- verify against pure-JAX fp32 reference ----------------
    # (tolerance reflects bf16 MXU operands with fp32 accumulation)
    ref = hgt_reference(params, graph, h,
                        n_heads=n_heads, d_k=d_k, out_dim=out_dim)
    for nt in node_dict:
        assert new_h[nt].shape == (n_nodes[nt], out_dim)
        assert jnp.allclose(new_h[nt], ref[nt], rtol=2e-2, atol=2e-2), nt

    print("KERNEL_OK")
</pallas_src>

<mosaic_0001>
module attributes {stable_mosaic.version = 11 : i64} {
  func.func @hgt_proj_kernel(%arg0: i32, %arg1: i32, %arg2: memref<1x128x32xbf16, #tpu.memory_space<vmem>>, %arg3: memref<1x32x96xbf16, #tpu.memory_space<vmem>>, %arg4: memref<1x1x96xf32, #tpu.memory_space<vmem>>, %arg5: memref<1x128x96xbf16, #tpu.memory_space<vmem>>) attributes {dimension_semantics = [#tpu.dimension_semantics<parallel>, #tpu.dimension_semantics<parallel>], iteration_bounds = array<i64: 2, 1>, scalar_prefetch = 0 : i64, scratch_operands = 0 : i64, tpu.core_type = #tpu.core_type<tc>, window_params = [{transform_indices = @transform_0, window_bounds = array<i64: 1, 128, 32>}, {transform_indices = @transform_1, window_bounds = array<i64: 1, 32, 96>}, {transform_indices = @transform_2, window_bounds = array<i64: 1, 1, 96>}, {transform_indices = @transform_3, window_bounds = array<i64: 1, 128, 96>}]} {
    %c0 = arith.constant 0 : index
    %c0_0 = arith.constant 0 : index
    %c0_1 = arith.constant 0 : index
    %0 = vector.load %arg2[%c0, %c0_0, %c0_1] : memref<1x128x32xbf16, #tpu.memory_space<vmem>>, vector<1x128x32xbf16>
    %1 = vector.shape_cast %0 : vector<1x128x32xbf16> to vector<128x32xbf16>
    %c0_2 = arith.constant 0 : index
    %c0_3 = arith.constant 0 : index
    %c0_4 = arith.constant 0 : index
    %2 = vector.load %arg3[%c0_2, %c0_3, %c0_4] : memref<1x32x96xbf16, #tpu.memory_space<vmem>>, vector<1x32x96xbf16>
    %3 = vector.shape_cast %2 : vector<1x32x96xbf16> to vector<32x96xbf16>
    %cst = arith.constant dense<0.000000e+00> : vector<128x96xf32>
    %4 = tpu.matmul %1, %3, %cst {dimension_numbers = #tpu.dot_dimension_numbers<[1], [0], [0], [1], [0, 0, 1, 1], [], []>} : vector<128x32xbf16>, vector<32x96xbf16>, vector<128x96xf32> -> vector<128x96xf32>
    %c0_5 = arith.constant 0 : index
    %c0_6 = arith.constant 0 : index
    %c0_7 = arith.constant 0 : index
    %5 = vector.load %arg4[%c0_5, %c0_6, %c0_7] : memref<1x1x96xf32, #tpu.memory_space<vmem>>, vector<1x1x96xf32>
    %6 = vector.shape_cast %5 : vector<1x1x96xf32> to vector<1x96xf32>
    %7 = vector.broadcast %6 : vector<1x96xf32> to vector<128x96xf32>
    %8 = arith.addf %4, %7 : vector<128x96xf32>
    %9 = arith.truncf %8 : vector<128x96xf32> to vector<128x96xbf16>
    %c0_8 = arith.constant 0 : index
    %c0_9 = arith.constant 0 : index
    %c0_10 = arith.constant 0 : index
    %10 = vector.load %arg5[%c0_8, %c0_9, %c0_10] : memref<1x128x96xbf16, #tpu.memory_space<vmem>>, vector<1x128x96xbf16>
    %11 = vector.shape_cast %10 : vector<1x128x96xbf16> to vector<128x96xbf16>
    %12 = vector.shape_cast %9 : vector<128x96xbf16> to vector<1x128x96xbf16>
    tpu.vector_store %arg5[%c0_8, %c0_9, %c0_10], %12 {strides = array<i32>} : memref<1x128x96xbf16, #tpu.memory_space<vmem>>, vector<1x128x96xbf16>,
    return
  }
  func.func @transform_0(%arg0: i32, %arg1: i32) -> (i32, i32, i32) {
    %c0_i32 = arith.constant 0 : i32
    %c0_i32_0 = arith.constant 0 : i32
    return %arg0, %arg1, %c0_i32 : i32, i32, i32
  }
  func.func @transform_1(%arg0: i32, %arg1: i32) -> (i32, i32, i32) {
    %c0_i32 = arith.constant 0 : i32
    %c0_i32_0 = arith.constant 0 : i32
    %c0_i32_1 = arith.constant 0 : i32
    return %arg0, %c0_i32, %c0_i32_0 : i32, i32, i32
  }
  func.func @transform_2(%arg0: i32, %arg1: i32) -> (i32, i32, i32) {
    %c0_i32 = arith.constant 0 : i32
    %c0_i32_0 = arith.constant 0 : i32
    %c0_i32_1 = arith.constant 0 : i32
    return %arg0, %c0_i32, %c0_i32_0 : i32, i32, i32
  }
  func.func @transform_3(%arg0: i32, %arg1: i32) -> (i32, i32, i32) {
    %c0_i32 = arith.constant 0 : i32
    %c0_i32_0 = arith.constant 0 : i32
    return %arg0, %arg1, %c0_i32 : i32, i32, i32
  }
}

</mosaic_0001>

<bundles_post_ra>
// kernel: tpu_custom_call.1
= control target key start
LH: loop header
LB: loop body
LE: loop exit
PB: predicated region body
PF: predicated region fallthrough
CT: control target
= control target key end

     0   :  { %s814_s12 = smov 0   ;;  %s816_s13 = smov 0   ;;  %s904_s0 = inlined_call_operand.vmem [shape: bf16[2,128,32], index: 0, kind: input, shape index: {}]   ;;  %s905_s1 = inlined_call_operand.vmem [shape: bf16[2,32,96], index: 1, kind: input, shape index: {}]   ;;  %s906_s2 = inlined_call_operand.vmem [shape: f32[2,1,96], index: 2, kind: input, shape index: {}]   ;;  %s907_s3 = inlined_call_operand.vmem [shape: bf16[2,128,96], index: 3, kind: output, shape index: {}]  }
   0x1   :  { %s818_s14 = smov 0  }
   0x2 LB: > { %s25_s15 = sadd.s32 1, %s788_s13  ;;  %p639_p0 = scmp.ge.s32.totalorder %s792_s14, 1  ;;  %s792_s14 = sphi %s818_s14, %s13_s14   ;;  %s788_s13 = sphi %s816_s13, %s909_s13   ;;  %s784_s12 = sphi %s814_s12, %s908_s12  }
   0x3   : > { %p27_p1 = scmp.ge.s32.totalorder %s25_s15, 2  ;;  %p176_p2 = scmp.lt.s32.totalorder %s792_s14, 3 }
   0x5   : > { %s911_s15 = smov (%p27_p1, %s25_s15), 0  ;;  %p177_p3 = pnand %p639_p0, %p176_p2 }
   0x6   : > { %p217_p4 = scmp.lt.s32.totalorder (!%p177_p3), %s784_s12, 1  ;;  %vm324_vm0 = vcmask (!%p177_p3), 261120   ;;  %vm510_vm1 = vcmask (!%p177_p3), 781312  }
   0x7   : > { %180 = sbr.rel (%p177_p3) target bundleno = 254 (0xfe), region = 32 }
   0xe   : > { %s913_s12 = smov (!%p217_p4, %s784_s12), 1 }
   0xf   : > { %s683_s16 = sshll.u32 %s913_s12, 6  ;;  %s684_s17 = sshll.u32 %s913_s12, 4 }
  0x10   : > { %s230_s20 = scalar_lea.vmem %s905_s1, %s684_s17  ;;  %s224_s23 = scalar_lea.vmem %s904_s0, %s683_s16 }
  0x11   : > { %v760_v0 = vld [vmem:[%s230_s20] sm:$0xff]   ;;  %v761_v1 = vld [vmem:[%s230_s20 + $0x8] sm:$0xff]   ;;  %v766_v6 = vld [vmem:[%s224_s23 + $0x10] sm:$0xff]   ;;  %s233_s26 = scalar_lea.vmem %s906_s2, %s913_s12  ;;  %s861_s29 = scalar_lea.vmem %s907_s3, %s683_s16 }
  0x12   : > { %712 = vmatprep.subr.bf16.mxu0 %v760_v0  ;;  %732 = vmatprep.subr.bf16.mxu1 %v760_v0  ;;  %v762_v2 = vld [vmem:[%s224_s23] sm:$0xff]   ;;  %v764_v4 = vld [vmem:[%s224_s23 + $0x8] sm:$0xff]   ;;  %v767_v7 = vld [vmem:[%s224_s23 + $0x30] sm:$0xff]  }
  0x13   : > { %713 = vmatpush3.bf16.msra.mxu0 %v760_v0  ;;  %734 = vmatpush3.bf16.msra.mxu1 %v760_v0  ;;  %v763_v3 = vld [vmem:[%s224_s23 + $0x20] sm:$0xff]   ;;  %v765_v5 = vld [vmem:[%s224_s23 + $0x28] sm:$0xff]   ;;  %v768_v8 = vld [vmem:[%s224_s23 + $0x18] sm:$0xff]  }
  0x14   : > { %714 = vmatprep.subr.bf16.mxu0 %v761_v1  ;;  %733 = vmatprep.subr.bf16.mxu1 %v761_v1  ;;  %v769_v9 = vld [vmem:[%s224_s23 + $0x38] sm:$0xff]   ;;  %v646_v10 = vld [vmem:[%s233_s26] ss:$0 sm:$0xff] }
  0x15   : > { %716 = vmatprep.mubr.msk.bf16.mxu0 %vm324_vm0, %v762_v2  ;;  %724 = vmatprep.mubr.msk.bf16.mxu1 %vm324_vm0, %v763_v3 }
  0x17   : > { %715 = vmatpush3.bf16.msra.mxu0 %v761_v1  ;;  %735 = vmatpush3.bf16.msra.mxu1 %v761_v1 }
  0x1a   : > { %717 = vmatmul.mubr.msk.bf16.vlgmr.msra.gmra.mrb[0].mxu0 %vm324_vm0, %v764_v4  ;;  %725 = vmatmul.mubr.msk.bf16.vlgmr.msra.gmra.mrb[0].mxu1 %vm324_vm0, %v765_v5 }
  0x1b   : > { %720 = vmatprep.mubr.msk.bf16.mxu0 %vm324_vm0, %v766_v6  ;;  %728 = vmatprep.mubr.msk.bf16.mxu1 %vm324_vm0, %v767_v7 }
  0x22   : > { %721 = vmatmul.mubr.msk.bf16.gmra.mrb[4].mxu0 %vm324_vm0, %v768_v8  ;;  %729 = vmatmul.mubr.msk.bf16.gmra.mrb[4].mxu1 %vm324_vm0, %v769_v9 }
  0xed   : > { %v718_v11 = vpop.f32.mrb[0].mxu0  ;;  %v726_v12 = vpop.f32.mrb[0].mxu1 }
  0xee   : > { %v392_v13 = vadd.f32 %v718_v11, %v646_v10  ;;  %v424_v14 = vadd.f32 %v726_v12, %v646_v10  ;;  %v383_v15 = vpop.f32.mrb[1].mxu0  ;;  %v415_v16 = vpop.f32.mrb[1].mxu1 }
  0xef   : > { %v384_v17 = vadd.f32 %v646_v10, %v383_v15  ;;  %v416_v18 = vadd.f32 %v646_v10, %v415_v16  ;;  %v719_v19 = vpop.f32.mrb[2].mxu0  ;;  %v727_v20 = vpop.f32.mrb[2].mxu1 }
  0xf0   : > { %v688_v21 = vpack.c.bf16 %v392_v13, %v392_v13  ;;  %v696_v22 = vpack.c.bf16 %v424_v14, %v424_v14  ;;  %v395_v23 = vadd.f32 %v719_v19, %v646_v10  ;;  %v427_v24 = vadd.f32 %v727_v20, %v646_v10  ;;  %v386_v25 = vpop.f32.mrb[3].mxu0  ;;  %v418_v26 = vpop.f32.mrb[3].mxu1 }
  0xf1   : > { %v686_v27 = vpack.c.bf16 %v384_v17, %v384_v17  ;;  %v694_v28 = vpack.c.bf16 %v416_v18, %v416_v18  ;;  %v387_v29 = vadd.f32 %v646_v10, %v386_v25  ;;  %v419_v30 = vadd.f32 %v646_v10, %v418_v26 }
  0xf2   : > { %513 = vst.msk [vmem:[%s861_s29 + $0x8] sm:$0xf] %vm510_vm1, %v688_v21  ;;  %521 = vst.msk [vmem:[%s861_s29 + $0x28] sm:$0xf] %vm510_vm1, %v696_v22  ;;  %v689_v31 = vpack.c.bf16 %v395_v23, %v395_v23  ;;  %v697_v32 = vpack.c.bf16 %v427_v24, %v427_v24 }
  0xf3   : > { %511 = vst.msk [vmem:[%s861_s29] sm:$0xf] %vm510_vm1, %v686_v27  ;;  %519 = vst.msk [vmem:[%s861_s29 + $0x20] sm:$0xf] %vm510_vm1, %v694_v28  ;;  %v687_v33 = vpack.c.bf16 %v387_v29, %v387_v29  ;;  %v695_v34 = vpack.c.bf16 %v419_v30, %v419_v30 }
  0xf4   : > { %514 = vst.msk [vmem:[%s861_s29 + $0xc] sm:$0xf] %vm510_vm1, %v689_v31  ;;  %522 = vst.msk [vmem:[%s861_s29 + $0x2c] sm:$0xf] %vm510_vm1, %v697_v32 }
  0xf5   : > { %512 = vst.msk [vmem:[%s861_s29 + $0x4] sm:$0xf] %vm510_vm1, %v687_v33  ;;  %520 = vst.msk [vmem:[%s861_s29 + $0x24] sm:$0xf] %vm510_vm1, %v695_v34  ;;  %v722_v35 = vpop.f32.mrb[4].mxu0  ;;  %v730_v36 = vpop.f32.mrb[4].mxu1 }
  0xf6   : > { %v408_v37 = vadd.f32 %v722_v35, %v646_v10  ;;  %v440_v38 = vadd.f32 %v730_v36, %v646_v10  ;;  %v399_v39 = vpop.f32.mrb[5].mxu0  ;;  %v431_v40 = vpop.f32.mrb[5].mxu1 }
  0xf7   : > { %v400_v41 = vadd.f32 %v646_v10, %v399_v39  ;;  %v432_v42 = vadd.f32 %v646_v10, %v431_v40  ;;  %v723_v43 = vpop.f32.mrb[6].mxu0  ;;  %v731_v44 = vpop.f32.mrb[6].mxu1 }
  0xf8   : > { %v692_v45 = vpack.c.bf16 %v408_v37, %v408_v37  ;;  %v700_v46 = vpack.c.bf16 %v440_v38, %v440_v38  ;;  %v411_v47 = vadd.f32 %v723_v43, %v646_v10  ;;  %v443_v48 = vadd.f32 %v731_v44, %v646_v10  ;;  %v402_v49 = vpop.f32.mrb[7].mxu0  ;;  %v434_v50 = vpop.f32.mrb[7].mxu1 }
  0xf9   : > { %v690_v51 = vpack.c.bf16 %v400_v41, %v400_v41  ;;  %v698_v52 = vpack.c.bf16 %v432_v42, %v432_v42  ;;  %v403_v53 = vadd.f32 %v646_v10, %v402_v49  ;;  %v435_v54 = vadd.f32 %v646_v10, %v434_v50 }
  0xfa   : > { %517 = vst.msk [vmem:[%s861_s29 + $0x18] sm:$0xf] %vm510_vm1, %v692_v45  ;;  %525 = vst.msk [vmem:[%s861_s29 + $0x38] sm:$0xf] %vm510_vm1, %v700_v46  ;;  %v693_v55 = vpack.c.bf16 %v411_v47, %v411_v47  ;;  %v701_v56 = vpack.c.bf16 %v443_v48, %v443_v48 }
  0xfb   : > { %515 = vst.msk [vmem:[%s861_s29 + $0x10] sm:$0xf] %vm510_vm1, %v690_v51  ;;  %523 = vst.msk [vmem:[%s861_s29 + $0x30] sm:$0xf] %vm510_vm1, %v698_v52  ;;  %v691_v57 = vpack.c.bf16 %v403_v53, %v403_v53  ;;  %v699_v58 = vpack.c.bf16 %v435_v54, %v435_v54 }
  0xfc   : > { %518 = vst.msk [vmem:[%s861_s29 + $0x1c] sm:$0xf] %vm510_vm1, %v693_v55  ;;  %526 = vst.msk [vmem:[%s861_s29 + $0x3c] sm:$0xf] %vm510_vm1, %v701_v56 }
  0xfd   : > { %516 = vst.msk [vmem:[%s861_s29 + $0x14] sm:$0xf] %vm510_vm1, %v691_v57  ;;  %524 = vst.msk [vmem:[%s861_s29 + $0x34] sm:$0xf] %vm510_vm1, %v699_v58 }
  0xfe PF: > { %s13_s14 = sadd.s32 1, %s792_s14   ;;  %s908_s12 = smov %s788_s13 }
  0xff   : > { %p10_p5 = scmp.ge.s32.totalorder %s13_s14, 4   ;;  %s909_s13 = smov %s911_s15 }
 0x101   :  { %12 = sbr.rel (!%p10_p5) target bundleno = 2 (0x2), region = 68 }

</bundles_post_ra>
